<compile_context>
chip_gen: v7x
topology: tpu7x:2x2x1
jax: 0.10.0
libtpu: 0.0.40
codegen_flags: <defaults>
</compile_context>

<pallas_src>
import functools
import jax
import jax.numpy as jnp
from jax.experimental import pallas as pl
from jax.experimental.pallas import tpu as pltpu

LANES = 128            # vreg lane width (fast axis)
MAX_BLOCK_ROWS = 256   # rows per grid step; 2 inputs * 256*128*4B = 256 KiB/step (x2 for dbl-buffer)


def _hinge_reduce_kernel(y_ref, t_ref, o_ref, acc_ref, *, margin, scale):
    """Grid axis 0 is a reduction: accumulate per-lane partial sums, emit scaled scalar at the end."""
    step = pl.program_id(0)

    @pl.when(step == 0)
    def _():
        acc_ref[...] = jnp.zeros_like(acc_ref)

    loss = jnp.maximum(0.0, margin - y_ref[...] * t_ref[...])      # VPU elementwise
    acc_ref[...] += jnp.sum(loss, axis=0, keepdims=True)           # sublane reduce -> (1, LANES)

    @pl.when(step == pl.num_programs(0) - 1)
    def _():
        total = jnp.sum(acc_ref[...], axis=1, keepdims=True)       # single cross-lane reduce
        o_ref[...] = (total * scale).astype(o_ref.dtype)


def _hinge_elementwise_kernel(y_ref, t_ref, o_ref, *, margin):
    o_ref[...] = jnp.maximum(0.0, margin - y_ref[...] * t_ref[...]).astype(o_ref.dtype)


def hinge_loss(y, target, margin=1.0, reduction="mean"):
    """Matches Hinge_loss.forward: max(0, margin - y*target) with 'mean' | 'sum' | 'none'."""
    assert y.shape == target.shape
    orig_shape = y.shape
    n = int(y.size)

    # Flatten to a lane-dense (rows, 128) f32 slab. Padding is loss-neutral:
    # max(0, margin - margin*1) == 0, so it contributes nothing to sum/mean.
    rows = pl.cdiv(n, LANES)
    block_rows = min(MAX_BLOCK_ROWS, ((rows + 7) // 8) * 8)        # f32 sublane multiple
    rows_padded = pl.cdiv(rows, block_rows) * block_rows
    pad = rows_padded * LANES - n

    y2 = jnp.pad(y.reshape(-1).astype(jnp.float32), (0, pad),
                 constant_values=float(margin)).reshape(rows_padded, LANES)
    t2 = jnp.pad(target.reshape(-1).astype(jnp.float32), (0, pad),
                 constant_values=1.0).reshape(rows_padded, LANES)

    grid = (rows_padded // block_rows,)
    tile_spec = pl.BlockSpec((block_rows, LANES), lambda i: (i, 0))

    if reduction in ("mean", "sum"):
        scale = (1.0 / n) if reduction == "mean" else 1.0          # divide by UNPADDED count
        out = pl.pallas_call(
            functools.partial(_hinge_reduce_kernel, margin=float(margin), scale=scale),
            out_shape=jax.ShapeDtypeStruct((1, 1), jnp.float32),
            grid=grid,
            in_specs=[tile_spec, tile_spec],
            out_specs=pl.BlockSpec((1, 1), lambda i: (0, 0)),      # accumulator output
            scratch_shapes=[pltpu.VMEM((1, LANES), jnp.float32)],
            compiler_params=pltpu.CompilerParams(
                dimension_semantics=("arbitrary",)),               # grid axis is a reduction
        )(y2, t2)
        return out[0, 0]

    # reduction == 'none': elementwise, batch-parallel grid (shards across v7x's 2 TCs)
    out2d = pl.pallas_call(
        functools.partial(_hinge_elementwise_kernel, margin=float(margin)),
        out_shape=jax.ShapeDtypeStruct((rows_padded, LANES), jnp.float32),
        grid=grid,
        in_specs=[tile_spec, tile_spec],
        out_specs=tile_spec,
        compiler_params=pltpu.CompilerParams(
            dimension_semantics=("parallel",)),
    )(y2, t2)
    return out2d.reshape(-1)[:n].reshape(orig_shape)


def _reference(y, target, margin, reduction):
    l = jnp.maximum(0.0, margin - y * target)
    if reduction == "sum":
        return jnp.sum(l)
    if reduction == "mean":
        return jnp.mean(l)
    return l


if __name__ == "__main__":
    key = jax.random.PRNGKey(0)
    ky, kt, ky2, kt2 = jax.random.split(key, 4)

    # Typical classifier-score shape: (batch, 1) predictions vs {-1, +1} targets.
    y = jax.random.normal(ky, (512, 1), jnp.float32)
    target = jnp.sign(jax.random.normal(kt, (512, 1), jnp.float32))
    target = jnp.where(target == 0, 1.0, target)

    # Larger input that exercises the multi-step pipelined grid (4 tiles of 256x128).
    y_big = jax.random.normal(ky2, (2048, 64), jnp.float32)
    t_big = jnp.sign(jax.random.normal(kt2, (2048, 64), jnp.float32))
    t_big = jnp.where(t_big == 0, 1.0, t_big)

    for yy, tt in ((y, target), (y_big, t_big)):
        for red in ("mean", "sum", "none"):
            out = jax.block_until_ready(hinge_loss(yy, tt, margin=1.0, reduction=red))
            ref = _reference(yy, tt, 1.0, red)
            assert out.shape == ref.shape
            assert jnp.allclose(out, ref, rtol=1e-5, atol=1e-5), (red, out, ref)

    print("KERNEL_OK")
</pallas_src>

<mosaic_0001>
module attributes {stable_mosaic.version = 11 : i64} {
  func.func @_hinge_reduce_kernel(%arg0: i32, %arg1: memref<8x128xf32, #tpu.memory_space<vmem>>, %arg2: memref<8x128xf32, #tpu.memory_space<vmem>>, %arg3: memref<1x1xf32, #tpu.memory_space<vmem>>, %arg4: memref<1x128xf32, #tpu.memory_space<vmem>>) attributes {dimension_semantics = [#tpu.dimension_semantics<arbitrary>], iteration_bounds = array<i64: 1>, scalar_prefetch = 0 : i64, scratch_operands = 1 : i64, tpu.core_type = #tpu.core_type<tc>, window_params = [{transform_indices = @transform_0, window_bounds = array<i64: 8, 128>}, {transform_indices = @transform_1, window_bounds = array<i64: 8, 128>}, {pipeline_mode = #tpu.pipeline_mode<synchronous>, transform_indices = @transform_2, window_bounds = array<i64: 1, 1>}]} {
    %c0_i32 = arith.constant 0 : i32
    %0 = arith.cmpi eq, %arg0, %c0_i32 : i32
    %1 = arith.extui %0 : i1 to i32
    %c0_i32_0 = arith.constant 0 : i32
    %2 = arith.cmpi ne, %1, %c0_i32_0 : i32
    scf.if %2 {
      %cst_12 = arith.constant 0.000000e+00 : f32
      %18 = vector.broadcast %cst_12 : f32 to vector<1x128xf32>
      %c0_13 = arith.constant 0 : index
      %c0_14 = arith.constant 0 : index
      %19 = vector.load %arg4[%c0_13, %c0_14] : memref<1x128xf32, #tpu.memory_space<vmem>>, vector<1x128xf32>
      tpu.vector_store %arg4[%c0_13, %c0_14], %18 {strides = array<i32>} : memref<1x128xf32, #tpu.memory_space<vmem>>, vector<1x128xf32>,
    } else {
    }
    %c0 = arith.constant 0 : index
    %c0_1 = arith.constant 0 : index
    %3 = vector.load %arg1[%c0, %c0_1] : memref<8x128xf32, #tpu.memory_space<vmem>>, vector<8x128xf32>
    %c0_2 = arith.constant 0 : index
    %c0_3 = arith.constant 0 : index
    %4 = vector.load %arg2[%c0_2, %c0_3] : memref<8x128xf32, #tpu.memory_space<vmem>>, vector<8x128xf32>
    %5 = arith.mulf %3, %4 : vector<8x128xf32>
    %cst = arith.constant 1.000000e+00 : f32
    %6 = vector.broadcast %cst : f32 to vector<8x128xf32>
    %7 = arith.subf %6, %5 : vector<8x128xf32>
    %cst_4 = arith.constant 0.000000e+00 : f32
    %8 = vector.broadcast %cst_4 : f32 to vector<8x128xf32>
    %9 = arith.maximumf %8, %7 : vector<8x128xf32>
    %c0_5 = arith.constant 0 : index
    %c0_6 = arith.constant 0 : index
    %10 = vector.load %arg4[%c0_5, %c0_6] : memref<1x128xf32, #tpu.memory_space<vmem>>, vector<1x128xf32>
    %cst_7 = arith.constant dense<0.000000e+00> : vector<128xf32>
    %11 = vector.multi_reduction <add>, %9, %cst_7 [0] : vector<8x128xf32> to vector<128xf32>
    %12 = vector.shape_cast %11 : vector<128xf32> to vector<1x128xf32>
    %13 = arith.addf %10, %12 : vector<1x128xf32>
    %c0_8 = arith.constant 0 : index
    %c0_9 = arith.constant 0 : index
    %14 = vector.load %arg4[%c0_8, %c0_9] : memref<1x128xf32, #tpu.memory_space<vmem>>, vector<1x128xf32>
    tpu.vector_store %arg4[%c0_8, %c0_9], %13 {strides = array<i32>} : memref<1x128xf32, #tpu.memory_space<vmem>>, vector<1x128xf32>,
    %c0_i32_10 = arith.constant 0 : i32
    %15 = arith.cmpi eq, %arg0, %c0_i32_10 : i32
    %16 = arith.extui %15 : i1 to i32
    %c0_i32_11 = arith.constant 0 : i32
    %17 = arith.cmpi ne, %16, %c0_i32_11 : i32
    scf.if %17 {
      %c0_12 = arith.constant 0 : index
      %c0_13 = arith.constant 0 : index
      %18 = vector.load %arg4[%c0_12, %c0_13] : memref<1x128xf32, #tpu.memory_space<vmem>>, vector<1x128xf32>
      %cst_14 = arith.constant dense<0.000000e+00> : vector<1xf32>
      %19 = vector.multi_reduction <add>, %18, %cst_14 [1] : vector<1x128xf32> to vector<1xf32>
      %20 = vector.shape_cast %19 : vector<1xf32> to vector<1x1xf32>
      %cst_15 = arith.constant 0.001953125 : f32
      %21 = vector.broadcast %cst_15 : f32 to vector<1x1xf32>
      %22 = arith.mulf %20, %21 : vector<1x1xf32>
      %c0_16 = arith.constant 0 : index
      %c0_17 = arith.constant 0 : index
      %23 = vector.load %arg3[%c0_16, %c0_17] : memref<1x1xf32, #tpu.memory_space<vmem>>, vector<1x1xf32>
      tpu.vector_store %arg3[%c0_16, %c0_17], %22 {strides = array<i32>} : memref<1x1xf32, #tpu.memory_space<vmem>>, vector<1x1xf32>,
    } else {
    }
    return
  }
  func.func @transform_0(%arg0: i32) -> (i32, i32) {
    %c0_i32 = arith.constant 0 : i32
    %c0_i32_0 = arith.constant 0 : i32
    return %arg0, %c0_i32 : i32, i32
  }
  func.func @transform_1(%arg0: i32) -> (i32, i32) {
    %c0_i32 = arith.constant 0 : i32
    %c0_i32_0 = arith.constant 0 : i32
    return %arg0, %c0_i32 : i32, i32
  }
  func.func @transform_2(%arg0: i32) -> (i32, i32) {
    %c0_i32 = arith.constant 0 : i32
    %c0_i32_0 = arith.constant 0 : i32
    %c0_i32_1 = arith.constant 0 : i32
    return %c0_i32, %c0_i32_0 : i32, i32
  }
}

</mosaic_0001>

<bundles_post_ra>
// kernel: tpu_custom_call.1
= control target key start
LH: loop header
LB: loop body
LE: loop exit
PB: predicated region body
PF: predicated region fallthrough
CT: control target
= control target key end

     0   :  { %7 = vsyncpa [#allocation4], 0  ;;  %s213_s0 = inlined_call_operand.hbm [shape: f32[8,128], index: 0, kind: input, shape index: {}]   ;;  %s214_s1 = inlined_call_operand.hbm [shape: f32[8,128], index: 1, kind: input, shape index: {}]   ;;  %s215_s2 = inlined_call_operand.hbm [shape: f32[1,1], index: 2, kind: output, shape index: {}]  }
   0x1   :  { %8 = vsyncpa [#allocation7], 0 }
   0x2   :  { %9 = vsyncpa [#allocation5], 0  ;;  %s158_s9 = smov [#allocation3]   ;;  %s159_s11 = smov [#allocation6]  }
   0x3   :  { %s16_s10 = sshll.u32 %s158_s9, 4  ;;  %s26_s12 = sshll.u32 %s159_s11, 4  ;;  %s17_s10 = int_to_ptr.vmem [resolvable:$true] %s16_s10  ;;  %s27_s12 = int_to_ptr.vmem [resolvable:$true] %s26_s12 }
   0x4   :  { %s86_s15 = scalar_lea.hbm %s213_s0, 128 }
   0x5   :  { %p87_p0 = scmp.ne.s32.totalorder %s213_s0, %s86_s15  ;;  %p90_p1 = scmp.lt.u32.totalorder %s86_s15, %s213_s0 }
   0x7   :  { %p92_p2 = pnand %p90_p1, %p87_p0 }
   0x9   :  { %95 = shalt.err (!%p92_p2)
}
   0xa   :  { %s96_s20 = scalar_lea.vmem %s17_s10, 128  ;;  %p101_p4 = scmp.lt.s32.totalorder %s17_s10, %s17_s10 }
   0xb   :  { %p97_p3 = scmp.ne.s32.totalorder %s17_s10, %s96_s20  ;;  %p102_p5 = scmp.lt.s32.totalorder %s96_s20, %s96_s20 }
   0xd   :  { %p103_p6 = por %p102_p5, %p101_p4 }
   0xf   :  { %p104_p7 = pnand %p103_p6, %p97_p3 }
  0x11   :  { %107 = shalt.err (!%p104_p7)
}
  0x12   :  { %19 = dma.hbm_to_vmem [thread:$0]  %s213_s0, 128, %s17_s10, [#allocation4]  }
  0x13   :  { %s108_s25 = scalar_lea.hbm %s214_s1, 128 }
  0x14   :  { %p109_p8 = scmp.ne.s32.totalorder %s214_s1, %s108_s25  ;;  %p112_p9 = scmp.lt.u32.totalorder %s108_s25, %s214_s1 }
  0x16   :  { %p114_p10 = pnand %p112_p9, %p109_p8 }
  0x18   :  { %117 = shalt.err (!%p114_p10)
}
  0x19   :  { %s118_s30 = scalar_lea.vmem %s27_s12, 128  ;;  %p123_p12 = scmp.lt.s32.totalorder %s27_s12, %s27_s12 }
  0x1a   :  { %p119_p11 = scmp.ne.s32.totalorder %s27_s12, %s118_s30  ;;  %p124_p13 = scmp.lt.s32.totalorder %s118_s30, %s118_s30 }
  0x1c   :  { %p125_p0 = por %p124_p13, %p123_p12 }
  0x1e   :  { %p126_p1 = pnand %p125_p0, %p119_p11 }
  0x20   :  { %129 = shalt.err (!%p126_p1)
}
  0x21   :  { %29 = dma.hbm_to_vmem [thread:$0]  %s214_s1, 128, %s27_s12, [#allocation7]  }
  0x22   :  { %152 = dma.done.wait [#allocation4], 128  }
  0x23   :  { %153 = vsyncadd [#allocation4], 4294967168 }
  0x24   :  { %154 = dma.done.wait [#allocation7], 128  }
  0x25   :  { %155 = vsyncadd [#allocation7], 4294967168  ;;  %v160_v0 = vmov 0.0   ;;  %v41_v1 = vld [vmem:[#allocation3] sm:$0xff]  ;;  %v42_v2 = vld [vmem:[#allocation6] sm:$0xff]  ;;  %vm59_vm0 = vcmask 1040384  }
  0x26   :  { %40 = vst [vmem:[#allocation2] sm:$0x1] %v160_v0  ;;  %v43_v3 = vmul.f32 %v42_v2, %v41_v1  ;;  %s161_s1 = smov [#allocation8]   ;;  %vm64_vm1 = vcmask 0  }
  0x27   :  { %s72_s4 = sshll.u32 %s161_s1, 4  ;;  %s73_s4 = int_to_ptr.vmem [resolvable:$true] %s72_s4 }
  0x28   :  { %v44_v4 = vsub.f32 1.0, %v43_v3  ;;  %s130_s5 = scalar_lea.vmem %s73_s4, 16  ;;  %s134_s6 = scalar_lea.vmem %s73_s4, 32 }
  0x29   :  { %p131_p2 = scmp.ne.s32.totalorder %s73_s4, %s130_s5  ;;  %p135_p3 = scmp.lt.s32.totalorder %s73_s4, %s73_s4 }
  0x2a   :  { %v45_v5 = vmax.f32 %v44_v4, 0.0  ;;  %p136_p4 = scmp.lt.s32.totalorder %s134_s6, %s130_s5 }
  0x2c   :  { %v47_v6 = vrot.slane %v45_v5, 4  ;;  %p137_p5 = por %p136_p4, %p135_p3 }
  0x2d   :  { %v46_v11 = vld [vmem:[#allocation2] sm:$0x1] }
  0x2e   :  { %v48_v7 = vadd.f32 %v47_v6, %v45_v5  ;;  %p138_p6 = pnand %p137_p5, %p131_p2 }
  0x30   :  { %v49_v8 = vrot.slane %v48_v7, 2 }
  0x32   :  { %v50_v9 = vadd.f32 %v49_v8, %v48_v7 }
  0x34   :  { %v51_v10 = vrot.slane %v50_v9, 1 }
  0x36   :  { %v52_v12 = vadd.f32 %v51_v10, %v50_v9 }
  0x38   :  { %v53_v13 = vadd.f32 %v52_v12, %v46_v11 }
  0x3a   :  { %54 = vst [vmem:[#allocation2] sm:$0x1] %v53_v13 }
  0x41   :  { %v58_v14 = vld [vmem:[#allocation2] sm:$0x1] }
  0x42   :  { %v60_v15 = vsel %vm59_vm0, %v58_v14, 0.0 }
  0x43   :  { %61 = vadd.xlane.f32.xlu0 %v60_v15 }
  0xd0   :  { %v62_v16 = vpop.xlane.xlu0 %61 }
  0xd1   :  { %v63_v17 = vmul.f32 0.001953125, %v62_v16 }
  0xd3   :  { %65 = vst.msk [vmem:[#allocation8] sm:$0x1] %vm64_vm1, %v63_v17 }
  0xd4   :  { %141 = shalt.err (!%p138_p6)
}
  0xd5   :  { %s142_s9 = scalar_lea.hbm %s215_s2, 16 }
  0xd6   :  { %p143_p7 = scmp.ne.s32.totalorder %s215_s2, %s142_s9  ;;  %p146_p8 = scmp.lt.u32.totalorder %s142_s9, %s215_s2 }
  0xd8   :  { %p148_p9 = pnand %p146_p8, %p143_p7 }
  0xda   :  { %151 = shalt.err (!%p148_p9)
}
  0xdb   :  { %75 = dma.vmem_to_hbm [thread:$0]  %s73_s4, 16, %s215_s2, [#allocation5]  }
  0xdc   :  { %156 = dma.done.wait [#allocation5], 16  }
  0xdd   :  { %157 = vsyncadd [#allocation5], 4294967280 }
  0xde   :  { %79 = vsyncpa [#allocation4], 1 }
  0xdf   :  { %80 = vsyncpa [#allocation7], 1 }
  0xe0   :  { %81 = vsyncpa [#allocation5], 1 }

</bundles_post_ra>
